<compile_context>
chip_gen: v7x
topology: tpu7x:2x2x1
jax: 0.10.0
libtpu: 0.0.40
codegen_flags: <defaults>
</compile_context>

<pallas_src>
import functools

import jax
import jax.numpy as jnp
from jax.experimental import pallas as pl
from jax.experimental.pallas import tpu as pltpu


def _round_up(a: int, b: int) -> int:
    return (a + b - 1) // b * b


def _vmem_capacity_bytes() -> int:
    """Physical VMEM per TensorCore; conservative fallback if unqueryable."""
    default = 64 * 1024 * 1024  # v7x per-TC size; safe everywhere
    try:
        get_info = getattr(pltpu, "get_tpu_info", None)
        if get_info is None:
            return default
        return int(getattr(get_info(), "vmem_capacity_bytes", default))
    except Exception:
        return default


def _default_tile_rows(n: int, c_pad: int, itemsize: int, vmem_bytes: int) -> int:
    # Per-row working set: 2x double-buffered input tile (input dtype) plus
    # roughly 4 (TM, C) f32 intermediates (f32 copy, exp, selects, iota).
    per_row = c_pad * (2 * itemsize + 4 * 4) + 64
    budget = int(vmem_bytes * 0.45)                 # headroom for the pipeline
    tr = max(8, min(budget // per_row, 1024))       # cap; sweep for your shapes
    tr = (tr // 8) * 8                              # sublane multiple
    tr = min(tr, _round_up(n, 8))                   # never exceed (padded) batch
    return int(max(tr, 8))


def _label_smoothing_kernel(x_ref, t_ref, out_ref, *, smoothing, c_real, n_real,
                            tile_rows, mask_rows):
    """Per row-tile: logsumexp over classes, gather x[target], mean over real
    classes, combine; write this tile's partial loss-sum to its SMEM slot."""
    confidence = 1.0 - smoothing

    x = x_ref[...].astype(jnp.float32)                       # (TM, Cp)
    t = t_ref[...]                                           # (TM, 1) int32

    # logsumexp over classes (padded class columns hold finfo.min -> exp == 0).
    m = jnp.max(x, axis=-1, keepdims=True)                   # (TM, 1)
    lse = jnp.log(jnp.sum(jnp.exp(x - m), axis=-1, keepdims=True))
    logz = m + lse                                           # (TM, 1)

    col = jax.lax.broadcasted_iota(jnp.int32, x.shape, 1)
    # x[row, target[row]] via a one-hot masked row-sum (single select pass).
    x_t = jnp.sum(jnp.where(col == t, x, 0.0), axis=-1, keepdims=True)

    if x.shape[-1] > c_real:          # static: class axis was padded
        x_sum = jnp.sum(jnp.where(col < c_real, x, 0.0), axis=-1, keepdims=True)
    else:
        x_sum = jnp.sum(x, axis=-1, keepdims=True)
    x_mean = x_sum * (1.0 / c_real)

    # loss_row = confidence*(logz - x[t]) + smoothing*(logz - mean(x))
    loss = logz - confidence * x_t - smoothing * x_mean      # (TM, 1)

    if mask_rows:                     # static: batch axis was padded
        row = (pl.program_id(0) * tile_rows
               + jax.lax.broadcasted_iota(jnp.int32, loss.shape, 0))
        loss = jnp.where(row < n_real, loss, 0.0)

    out_ref[0, 0] = jnp.sum(loss)     # per-tile partial sum (no cross-step acc)


def label_smoothing_cross_entropy(x, target, *, smoothing=0.3, tile_rows=None):
    """x: (N, C) float logits; target: (N,) integer class ids -> scalar f32."""
    assert smoothing < 1.0
    n, c = x.shape

    # Keep lanes dense for tiny class counts. For C >= 128 rely on the vocab
    # being 128-aligned upstream; padding big C here would cost an extra full
    # HBM copy, which a memory-bound kernel cannot afford.
    c_pad = 128 if c < 128 else c
    if c_pad != c:
        x = jnp.pad(x, ((0, 0), (0, c_pad - c)),
                    constant_values=jnp.finfo(x.dtype).min)

    vmem_bytes = _vmem_capacity_bytes()
    if tile_rows is None:
        tile_rows = _default_tile_rows(n, c_pad, jnp.dtype(x.dtype).itemsize,
                                       vmem_bytes)
    tile_rows = int(tile_rows)
    assert tile_rows % 8 == 0

    n_pad = _round_up(n, tile_rows)
    if n_pad != n:
        x = jnp.pad(x, ((0, n_pad - n), (0, 0)))
        target = jnp.pad(target, (0, n_pad - n))
    target2d = target.astype(jnp.int32).reshape(n_pad, 1)

    num_tiles = n_pad // tile_rows

    # TODO(synk): for very large C (vocab >= ~64k) add an inner "arbitrary"
    # class-grid axis with an online (flash-style) max/LSE + running gather so
    # tile_rows stays large within v7x's 64 MiB VMEM.

    kernel = functools.partial(
        _label_smoothing_kernel,
        smoothing=float(smoothing),
        c_real=int(c),
        n_real=int(n),
        tile_rows=tile_rows,
        mask_rows=(n_pad != n),
    )

    vmem_limit = min(int(vmem_bytes * 0.75), 100 * 1024 * 1024)

    partials = pl.pallas_call(
        kernel,
        out_shape=jax.ShapeDtypeStruct((num_tiles, 1), jnp.float32),
        grid_spec=pltpu.PrefetchScalarGridSpec(
            num_scalar_prefetch=0,
            grid=(num_tiles,),
            in_specs=[
                pl.BlockSpec((tile_rows, c_pad), lambda i: (i, 0)),
                pl.BlockSpec((tile_rows, 1), lambda i: (i, 0)),
            ],
            out_specs=pl.BlockSpec((1, 1), lambda i: (i, 0),
                                   memory_space=pltpu.SMEM),
        ),
        compiler_params=pltpu.CompilerParams(
            dimension_semantics=("parallel",),
            vmem_limit_bytes=vmem_limit,
        ),
    )(x, target2d)

    # Final (tiny) reduction + mean over the *real* row count in the wrapper.
    return jnp.sum(partials) / n


def _reference(x, target, smoothing=0.3):
    confidence = 1.0 - smoothing
    logprobs = jax.nn.log_softmax(x.astype(jnp.float32), axis=-1)
    nll = -jnp.take_along_axis(
        logprobs, target[:, None].astype(jnp.int32), axis=-1)[:, 0]
    smooth = -jnp.mean(logprobs, axis=-1)
    return jnp.mean(confidence * nll + smoothing * smooth)


if __name__ == "__main__":
    key = jax.random.PRNGKey(0)

    # Small shapes; exercise class-pad (C<128), row-mask (N%8!=0), bf16 input.
    checks = [
        (16, 32, jnp.float32),
        (13, 160, jnp.float32),
        (24, 256, jnp.bfloat16),
    ]
    for idx, (n, c, dtype) in enumerate(checks):
        kx, kt = jax.random.split(jax.random.fold_in(key, idx))
        x = jax.random.normal(kx, (n, c), dtype=jnp.float32).astype(dtype)
        target = jax.random.randint(kt, (n,), 0, c, dtype=jnp.int32)

        loss = label_smoothing_cross_entropy(x, target, smoothing=0.3)
        loss = jax.block_until_ready(loss)

        ref = _reference(x, target, smoothing=0.3)
        assert jnp.allclose(loss, ref, atol=1e-4, rtol=1e-4), (n, c, dtype, loss, ref)

    print("KERNEL_OK")
</pallas_src>

<mosaic_0001>
module attributes {stable_mosaic.version = 11 : i64} {
  func.func @_label_smoothing_kernel(%arg0: i32, %arg1: memref<16x128xf32, #tpu.memory_space<vmem>>, %arg2: memref<16x1xi32, #tpu.memory_space<vmem>>, %arg3: memref<1x1xf32, #tpu.memory_space<smem>>) attributes {dimension_semantics = [#tpu.dimension_semantics<parallel>], iteration_bounds = array<i64: 1>, scalar_prefetch = 0 : i64, scratch_operands = 0 : i64, tpu.core_type = #tpu.core_type<tc>, window_params = [{transform_indices = @transform_0, window_bounds = array<i64: 16, 128>}, {transform_indices = @transform_1, window_bounds = array<i64: 16, 1>}, {transform_indices = @transform_2, window_bounds = array<i64: 1, 1>}]} {
    %c0 = arith.constant 0 : index
    %c0_0 = arith.constant 0 : index
    %0 = vector.load %arg1[%c0, %c0_0] : memref<16x128xf32, #tpu.memory_space<vmem>>, vector<16x128xf32>
    %c0_1 = arith.constant 0 : index
    %c0_2 = arith.constant 0 : index
    %1 = vector.load %arg2[%c0_1, %c0_2] : memref<16x1xi32, #tpu.memory_space<vmem>>, vector<16x1xi32>
    %cst = arith.constant dense<0xFF800000> : vector<16xf32>
    %2 = vector.multi_reduction <maximumf>, %0, %cst [1] : vector<16x128xf32> to vector<16xf32>
    %3 = vector.shape_cast %2 : vector<16xf32> to vector<16x1xf32>
    %4 = vector.broadcast %3 : vector<16x1xf32> to vector<16x128xf32>
    %5 = arith.subf %0, %4 : vector<16x128xf32>
    %6 = math.exp %5 : vector<16x128xf32>
    %cst_3 = arith.constant dense<0.000000e+00> : vector<16xf32>
    %7 = vector.multi_reduction <add>, %6, %cst_3 [1] : vector<16x128xf32> to vector<16xf32>
    %8 = vector.shape_cast %7 : vector<16xf32> to vector<16x1xf32>
    %9 = math.log %8 : vector<16x1xf32>
    %10 = arith.addf %3, %9 : vector<16x1xf32>
    %11 = tpu.iota {dimensions = array<i32: 1>} : vector<16x128xi32>
    %12 = vector.broadcast %1 : vector<16x1xi32> to vector<16x128xi32>
    %13 = arith.cmpi eq, %11, %12 : vector<16x128xi32>
    %cst_4 = arith.constant 0.000000e+00 : f32
    %14 = vector.broadcast %cst_4 : f32 to vector<16x128xf32>
    %15 = arith.select %13, %0, %14 : vector<16x128xi1>, vector<16x128xf32>
    %cst_5 = arith.constant dense<0.000000e+00> : vector<16xf32>
    %16 = vector.multi_reduction <add>, %15, %cst_5 [1] : vector<16x128xf32> to vector<16xf32>
    %17 = vector.shape_cast %16 : vector<16xf32> to vector<16x1xf32>
    %c32_i32 = arith.constant 32 : i32
    %18 = vector.broadcast %c32_i32 : i32 to vector<16x128xi32>
    %19 = arith.cmpi slt, %11, %18 : vector<16x128xi32>
    %cst_6 = arith.constant 0.000000e+00 : f32
    %20 = vector.broadcast %cst_6 : f32 to vector<16x128xf32>
    %21 = arith.select %19, %0, %20 : vector<16x128xi1>, vector<16x128xf32>
    %cst_7 = arith.constant dense<0.000000e+00> : vector<16xf32>
    %22 = vector.multi_reduction <add>, %21, %cst_7 [1] : vector<16x128xf32> to vector<16xf32>
    %23 = vector.shape_cast %22 : vector<16xf32> to vector<16x1xf32>
    %cst_8 = arith.constant 3.125000e-02 : f32
    %24 = vector.broadcast %cst_8 : f32 to vector<16x1xf32>
    %25 = arith.mulf %23, %24 : vector<16x1xf32>
    %cst_9 = arith.constant 0.699999988 : f32
    %26 = vector.broadcast %cst_9 : f32 to vector<16x1xf32>
    %27 = arith.mulf %26, %17 : vector<16x1xf32>
    %28 = arith.subf %10, %27 : vector<16x1xf32>
    %cst_10 = arith.constant 3.000000e-01 : f32
    %29 = vector.broadcast %cst_10 : f32 to vector<16x1xf32>
    %30 = arith.mulf %29, %25 : vector<16x1xf32>
    %31 = arith.subf %28, %30 : vector<16x1xf32>
    %32 = vector.shape_cast %31 : vector<16x1xf32> to vector<1x16x1xf32>
    %cst_11 = arith.constant dense<0.000000e+00> : vector<1xf32>
    %33 = vector.multi_reduction <add>, %32, %cst_11 [1, 2] : vector<1x16x1xf32> to vector<1xf32>
    %34 = vector.shape_cast %33 : vector<1xf32> to vector<1x1x1xf32>
    %35 = vector.extract %34[0, 0, 0] : f32 from vector<1x1x1xf32>
    %c0_12 = arith.constant 0 : index
    %c0_13 = arith.constant 0 : index
    %36 = memref.load %arg3[%c0_12, %c0_13] : memref<1x1xf32, #tpu.memory_space<smem>>
    memref.store %35, %arg3[%c0_12, %c0_13] : memref<1x1xf32, #tpu.memory_space<smem>>
    return
  }
  func.func @transform_0(%arg0: i32) -> (i32, i32) {
    %c0_i32 = arith.constant 0 : i32
    %c0_i32_0 = arith.constant 0 : i32
    return %arg0, %c0_i32 : i32, i32
  }
  func.func @transform_1(%arg0: i32) -> (i32, i32) {
    %c0_i32 = arith.constant 0 : i32
    %c0_i32_0 = arith.constant 0 : i32
    return %arg0, %c0_i32 : i32, i32
  }
  func.func @transform_2(%arg0: i32) -> (i32, i32) {
    %c0_i32 = arith.constant 0 : i32
    %c0_i32_0 = arith.constant 0 : i32
    return %arg0, %c0_i32 : i32, i32
  }
}

</mosaic_0001>

<bundles_post_ra>
// kernel: tpu_custom_call.1
= control target key start
LH: loop header
LB: loop body
LE: loop exit
PB: predicated region body
PF: predicated region fallthrough
CT: control target
= control target key end

     0   :  { %v123_v2 = vmov 0   ;;  %s164_s0 = inlined_call_operand.vmem [shape: f32[16,128], index: 0, kind: input, shape index: {}]   ;;  %s165_s1 = inlined_call_operand.vmem [shape: s32[16,1], index: 1, kind: input, shape index: {}]   ;;  %s166_s2 = inlined_call_operand.hbm [shape: f32[1,1], index: 2, kind: output, shape index: {}]  }
   0x1   :  { %v12_v0 = vld [vmem:[%s164_s0] sm:$0xff]  ;;  %101 = vset.pattern.permute.xlu1 %v123_v2 }
   0x2   :  { %v14_v1 = vld [vmem:[%s165_s1] sm:$0xff]  ;;  %16 = vmax.xlane.f32.xlu0 %v12_v0 }
   0x3   :  { %7 = vsyncpa [#allocation3], 0  ;;  %v13_v3 = vld [vmem:[%s164_s0 + $0x8] sm:$0xff]  ;;  %39 = vperm.xlu1 %101, %v14_v1   ;;  %102 = vset.pattern.permute.xlu0 %v123_v2  ;;  %v36_v10 = vlaneseq  ;;  %vm69_vm3 = vcmask 7168   ;;  %s111_s18 = scalar_lea.hbm %s166_s2, 16 }
   0x4   :  { %v15_v4 = vld [vmem:[%s165_s1 + $0x8] sm:$0xff]  ;;  %p112_p0 = scmp.ne.s32.totalorder %s166_s2, %s111_s18  ;;  %p115_p1 = scmp.lt.u32.totalorder %s111_s18, %s166_s2 }
   0x5   :  { %v37_v12 = vand.u32 127, %v36_v10 }
   0x6   :  { %18 = vmax.xlane.f32.xlu0 %v13_v3  ;;  %p117_p2 = pnand %p115_p1, %p112_p0 }
   0x7   :  { %42 = vperm.xlu1 %101, %v15_v4   ;;  %vm52_vm2 = vcmp.lt.s32.totalorder %v37_v12, 32 }
   0x8   :  { %v53_v19 = vsel %vm52_vm2, %v12_v0, 0.0  ;;  %v54_v20 = vsel %vm52_vm2, %v13_v3, 0.0 }
  0x82   :  { %v40_v13 = vpop.permute.xlu1 %39 }
  0x83   :  { %vm44_vm0 = vcmp.eq.s32.totalorder %v37_v12, %v40_v13 }
  0x84   :  { %v46_v16 = vsel %vm44_vm0, %v12_v0, 0.0 }
  0x86   :  { %v43_v15 = vpop.permute.xlu1 %42 }
  0x87   :  { %vm45_vm1 = vcmp.eq.s32.totalorder %v37_v12, %v43_v15 }
  0x88   :  { %v47_v18 = vsel %vm45_vm1, %v13_v3, 0.0 }
  0x8f   :  { %v17_v5 = vpop.xlane.xlu0 %16 }
  0x90   :  { %v20_v6 = vsub.f32 %v12_v0, %v17_v5 }
  0x92   :  { %v22_v7 = vmul.f32 1.442695, %v20_v6 }
  0x93   :  { %v19_v8 = vpop.xlane.xlu0 %18 }
  0x94   :  { %103 = vpow2.f32 %v22_v7  ;;  %v21_v9 = vsub.f32 %v13_v3, %v19_v8 }
  0x96   :  { %v24_v11 = vmul.f32 1.442695, %v21_v9 }
  0x98   :  { %105 = vpow2.f32 %v24_v11 }
  0x9e   :  { %v104_v14 = vpop.eup %103 }
  0x9f   :  { %26 = vadd.xlane.f32.xlu0 %v104_v14 }
  0xa2   :  { %v106_v17 = vpop.eup %105 }
  0xa3   :  { %28 = vadd.xlane.f32.xlu1 %v106_v17  ;;  %48 = vadd.xlane.f32.xlu0 %v46_v16 }
  0xa7   :  { %50 = vadd.xlane.f32.xlu0 %v47_v18 }
  0xab   :  { %55 = vadd.xlane.f32.xlu0 %v53_v19 }
  0xaf   :  { %57 = vadd.xlane.f32.xlu0 %v54_v20 }
 0x12c   :  { %v27_v21 = vpop.xlane.xlu0 %26 }
 0x12d   :  { %107 = vlog2.f32 %v27_v21 }
 0x130   :  { %v29_v22 = vpop.xlane.xlu1 %28  ;;  %v49_v23 = vpop.xlane.xlu0 %48 }
 0x131   :  { %109 = vlog2.f32 %v29_v22  ;;  %v61_v30 = vmul.f32 0.7, %v49_v23 }
 0x134   :  { %v51_v24 = vpop.xlane.xlu0 %50 }
 0x135   :  { %v62_v38 = vmul.f32 0.7, %v51_v24 }
 0x137   :  { %v108_v25 = vpop.eup %107 }
 0x138   :  { %v31_v26 = vmul.f32 0.6931472, %v108_v25  ;;  %v56_v27 = vpop.xlane.xlu0 %55 }
 0x139   :  { %v59_v28 = vmul.f32 0.03125, %v56_v27 }
 0x13a   :  { %v34_v29 = vadd.f32 %v31_v26, %v17_v5 }
 0x13b   :  { %v110_v31 = vpop.eup %109  ;;  %v65_v34 = vmul.f32 0.3, %v59_v28 }
 0x13c   :  { %v33_v32 = vmul.f32 0.6931472, %v110_v31  ;;  %v63_v33 = vsub.f32 %v34_v29, %v61_v30  ;;  %v58_v35 = vpop.xlane.xlu0 %57 }
 0x13d   :  { %v60_v36 = vmul.f32 0.03125, %v58_v35 }
 0x13e   :  { %v35_v37 = vadd.f32 %v33_v32, %v19_v8  ;;  %v67_v41 = vsub.f32 %v63_v33, %v65_v34 }
 0x13f   :  { %v66_v39 = vmul.f32 0.3, %v60_v36 }
 0x140   :  { %v64_v40 = vsub.f32 %v35_v37, %v62_v38  ;;  %v70_v43 = vsel %vm69_vm3, %v67_v41, 0.0 }
 0x142   :  { %v68_v42 = vsub.f32 %v64_v40, %v66_v39 }
 0x144   :  { %v71_v44 = vsel %vm69_vm3, %v68_v42, 0.0 }
 0x145   :  { %v72_v45 = vadd.f32 %v71_v44, %v70_v43 }
 0x147   :  { %73 = vadd.xlane.f32.xlu0 %v72_v45 }
 0x1d4   :  { %v74_v46 = vpop.xlane.xlu0 %73 }
 0x1d5   :  { %v75_v47 = vrot.slane %v74_v46, 4 }
 0x1d7   :  { %v76_v48 = vadd.f32 %v75_v47, %v74_v46 }
 0x1d9   :  { %v77_v49 = vrot.slane %v76_v48, 2 }
 0x1db   :  { %v78_v50 = vadd.f32 %v77_v49, %v76_v48 }
 0x1dd   :  { %v79_v51 = vrot.slane %v78_v50, 1 }
 0x1df   :  { %v80_v52 = vadd.f32 %v79_v51, %v78_v50 }
 0x1e1   :  { %97 = vpush %v80_v52 }
 0x212   :  { %s98_s0 = spop %97 }
 0x213   :  { %83 = sst [smem:[#allocation2]] %s98_s0 }
 0x214   :  { %120 = shalt.err (!%p117_p2)
}
 0x215   :  { %s124_s23 = smov [#allocation2]  }
 0x216   :  { %91 = dma.smem_to_hbm %s124_s23, 16, %s166_s2, [#allocation3]  }
 0x217   :  { %121 = dma.done.wait [#allocation3], 16  }
 0x218   :  { %122 = vsyncadd [#allocation3], 4294967280 }
 0x219   :  { %95 = sfence }
 0x21a   :  { %96 = vsyncpa [#allocation3], 1 }

</bundles_post_ra>
